<compile_context>
chip_gen: v6e
topology: v6e:2x2x1
jax: 0.10.0
libtpu: 0.0.40
codegen_flags: <defaults>
</compile_context>

<pallas_src>
import functools

import jax
import jax.numpy as jnp
from jax import lax
from jax.experimental import pallas as pl
from jax.experimental.pallas import tpu as pltpu


def _round_up(x, m):
    return ((x + m - 1) // m) * m


def _sublane_multiple(dtype):
    # Sub-32-bit dtypes pack along sublanes: f32 -> 8, bf16 -> 16, int8/fp8 -> 32.
    return max(8, 32 // jnp.dtype(dtype).itemsize)


def _vmem_limit_bytes():
    # ~3/4 of physical per-core VMEM, capped at 100 MiB:
    #   v5e/v6e (128 MiB) -> 96 MiB, v7x (64 MiB) -> 48 MiB.
    try:
        cap = pltpu.get_tpu_info().vmem_capacity_bytes
        return int(min(cap * 3 // 4, 100 * 1024 * 1024))
    except Exception:
        return 48 * 1024 * 1024  # safe on every generation


def _make_linear_kernel(has_bias, acc_in_out, precision):
    """Kernel specialized on (bias present, accumulate-into-output) statics.

    Ref order from pallas_call: x, w, [bias], out, [acc scratch].
    """

    def kernel(x_ref, w_ref, *rest):
        if acc_in_out:                       # f32 output doubles as accumulator
            if has_bias:
                b_ref, o_ref = rest
            else:
                (o_ref,) = rest
            acc_ref = o_ref
        else:                                # separate f32 scratch accumulator
            if has_bias:
                b_ref, o_ref, acc_ref = rest
            else:
                o_ref, acc_ref = rest

        k = pl.program_id(2)

        @pl.when(k == 0)
        def _():
            acc_ref[...] = jnp.zeros_like(acc_ref)

        # Weight is pre-transposed to [K, N]: plain MXU matmul, no per-step
        # XLU transpose / layout shuffle of the weight tile.
        acc_ref[...] += jnp.dot(
            x_ref[...], w_ref[...],
            preferred_element_type=jnp.float32,
            precision=precision,
        )

        if has_bias or not acc_in_out:
            @pl.when(k == pl.num_programs(2) - 1)
            def _():
                out = acc_ref[...]
                if has_bias:
                    out = out + b_ref[...].astype(jnp.float32)
                o_ref[...] = out.astype(o_ref.dtype)

    return kernel


@functools.partial(jax.jit, static_argnames=("n", "k", "tn", "tk", "precision"))
def _linear_apply(x, w_kn, b, *, n, k, tn, tk, precision):
    """y = x @ W^T + b with W already padded & transposed to [K_pad, N_pad]."""
    leading = x.shape[:-1]
    x2d = x.reshape(-1, k)
    m = x2d.shape[0]
    k_p, n_p = w_kn.shape

    # M tile: large for big GEMMs, clamped with dtype-aware sublane rounding
    # for small / decode-style M.
    sub = _sublane_multiple(x.dtype)
    tm = min(512, _round_up(m, sub))
    m_p = _round_up(m, tm)

    # Only the activation is padded per call (weight/bias were padded once at
    # setup); usually a no-op on K when in_features is already lane-aligned.
    x_p = jnp.pad(x2d, ((0, m_p - m), (0, k_p - k)))

    # Megacore: guarantee at least one "parallel" grid axis has extent >= 2
    # whenever possible so both TensorCores (v7x) get work.
    tn_run = tn
    if m_p // tm == 1 and n_p // tn_run == 1 and (tn_run // 2) % 128 == 0:
        tn_run //= 2
    grid = (m_p // tm, n_p // tn_run, k_p // tk)

    has_bias = b is not None
    acc_in_out = jnp.dtype(x.dtype) == jnp.float32  # f32 output == accumulator

    in_specs = [
        pl.BlockSpec((tm, tk), lambda i, j, kk: (i, kk)),        # x tile
        pl.BlockSpec((tk, tn_run), lambda i, j, kk: (kk, j)),    # W tile [K,N]
    ]
    args = [x_p, w_kn]
    if has_bias:
        in_specs.append(pl.BlockSpec((1, tn_run), lambda i, j, kk: (0, j)))
        args.append(b)
    out_specs = pl.BlockSpec((tm, tn_run), lambda i, j, kk: (i, j))
    scratch = [] if acc_in_out else [pltpu.VMEM((tm, tn_run), jnp.float32)]

    itemsize = jnp.dtype(x.dtype).itemsize
    m_tiles, n_tiles = m_p // tm, n_p // tn_run
    cost = pl.CostEstimate(
        flops=2 * m_p * k_p * n_p,
        transcendentals=0,
        bytes_accessed=(m_p * k_p * n_tiles       # x re-streamed per N tile
                        + k_p * n_p * m_tiles     # W re-streamed per M tile
                        + m_p * n_p) * itemsize,  # output written once
    )

    out = pl.pallas_call(
        _make_linear_kernel(has_bias, acc_in_out, precision),
        out_shape=jax.ShapeDtypeStruct((m_p, n_p), x.dtype),
        grid_spec=pltpu.PrefetchScalarGridSpec(
            num_scalar_prefetch=0,
            grid=grid,
            in_specs=in_specs,
            out_specs=out_specs,
            scratch_shapes=scratch,
        ),
        compiler_params=pltpu.CompilerParams(
            dimension_semantics=("parallel", "parallel", "arbitrary"),
            vmem_limit_bytes=_vmem_limit_bytes(),
        ),
        cost_estimate=cost,
    )(*args)

    out = out[:m, :n]
    return out.reshape(*leading, n)


class PallasLinear:
    """Forward of neuzip Linear: y = x @ weight.T + bias.

    The weight is padded and transposed to [K_pad, N_pad] ONCE at construction
    (one-time HBM copy amortized over all calls); the per-call jit path only
    pads activations and launches the kernel.
    """

    def __init__(self, weight, bias=None, *, tn=None, tk=None):
        self.out_features, self.in_features = weight.shape
        n, k = self.out_features, self.in_features

        # N/K tiles: prefer multiples of 256 (full v6e/v7x MXU tiles) for large
        # dims, 128 for small ragged dims; defaults give ~11 MiB f32 of VMEM
        # including double-buffering plus the accumulator.
        self.tn = tn or min(512, _round_up(n, 256 if n >= 256 else 128))
        self.tk = tk or min(1024, _round_up(k, 256 if k >= 256 else 128))

        n_p = _round_up(n, self.tn)
        k_p = _round_up(k, self.tk)

        # One-time pad + transpose to [K, N].
        w_kn = jnp.transpose(weight)
        self.w_kn = jnp.pad(w_kn, ((0, k_p - k), (0, n_p - n)))
        if bias is not None:
            self.b = jnp.pad(bias, (0, n_p - n)).reshape(1, n_p)
        else:
            self.b = None

    def __call__(self, x, precision=lax.Precision.DEFAULT):
        return _linear_apply(
            x, self.w_kn, self.b,
            n=self.out_features, k=self.in_features,
            tn=self.tn, tk=self.tk, precision=precision,
        )


if __name__ == "__main__":
    key = jax.random.PRNGKey(0)

    # Test 1: module-scale shapes (batch=2, seq=8, hidden 32 -> 64), with bias.
    batch, seq, in_f, out_f = 2, 8, 32, 64
    kx, kw, kb, key = jax.random.split(key, 4)
    x = jax.random.normal(kx, (batch, seq, in_f), dtype=jnp.float32)
    w = jax.random.normal(kw, (out_f, in_f), dtype=jnp.float32) * 0.05
    b = jax.random.normal(kb, (out_f,), dtype=jnp.float32) * 0.05

    lin = PallasLinear(w, b)
    y = jax.block_until_ready(lin(x))
    y_ref = jnp.matmul(x, w.T, precision=lax.Precision.HIGHEST) + b
    assert y.shape == (batch, seq, out_f)
    # Tolerance documents the default (bf16-pass) MXU precision for f32 inputs;
    # pass precision=lax.Precision.HIGHEST to lin(...) for full f32 fidelity.
    assert jnp.allclose(y, y_ref, atol=2e-2, rtol=2e-2), \
        float(jnp.max(jnp.abs(y - y_ref)))

    # Test 2: ragged dims, multi-tile N grid, bias=None (exercises the no-bias
    # kernel, padding, K reduction and the accumulate-into-output path).
    b2, s2, k2, n2 = 4, 96, 192, 320
    kx, kw, key = jax.random.split(key, 3)
    x2 = jax.random.normal(kx, (b2, s2, k2), dtype=jnp.float32)
    w2 = jax.random.normal(kw, (n2, k2), dtype=jnp.float32) * 0.02
    lin2 = PallasLinear(w2, None)
    y2 = jax.block_until_ready(lin2(x2))
    y2_ref = jnp.matmul(x2, w2.T, precision=lax.Precision.HIGHEST)
    assert y2.shape == (b2, s2, n2)
    assert jnp.allclose(y2, y2_ref, atol=2e-2, rtol=2e-2), \
        float(jnp.max(jnp.abs(y2 - y2_ref)))

    # Test 3: bf16 inputs (exercises dtype-aware sublane rounding and the
    # separate f32 accumulator-scratch path).
    kx, kw, kb, key = jax.random.split(key, 4)
    x3 = jax.random.normal(kx, (batch, seq, in_f), jnp.float32).astype(jnp.bfloat16)
    w3 = (jax.random.normal(kw, (out_f, in_f), jnp.float32) * 0.05).astype(jnp.bfloat16)
    b3 = (jax.random.normal(kb, (out_f,), jnp.float32) * 0.05).astype(jnp.bfloat16)
    lin3 = PallasLinear(w3, b3)
    y3 = jax.block_until_ready(lin3(x3))
    y3_ref = (jnp.matmul(x3.astype(jnp.float32), w3.astype(jnp.float32).T,
                         precision=lax.Precision.HIGHEST)
              + b3.astype(jnp.float32))
    assert y3.shape == (batch, seq, out_f)
    assert jnp.allclose(y3.astype(jnp.float32), y3_ref, atol=3e-2, rtol=3e-2), \
        float(jnp.max(jnp.abs(y3.astype(jnp.float32) - y3_ref)))

    # TODO(synk): the neuzip "manager" compressed-weight storage/decompression
    # (Parameter / CompressedLinear.apply) has no Pallas equivalent; dense
    # weights stand in for the decompressed W.
    print("KERNEL_OK")
</pallas_src>

<mosaic_0001>
module attributes {stable_mosaic.version = 11 : i64} {
  func.func @kernel(%arg0: i32, %arg1: i32, %arg2: i32, %arg3: memref<16x128xf32, #tpu.memory_space<vmem>>, %arg4: memref<128x128xf32, #tpu.memory_space<vmem>>, %arg5: memref<1x128xf32, #tpu.memory_space<vmem>>, %arg6: memref<16x128xf32, #tpu.memory_space<vmem>>) attributes {dimension_semantics = [#tpu.dimension_semantics<parallel>, #tpu.dimension_semantics<parallel>, #tpu.dimension_semantics<arbitrary>], iteration_bounds = array<i64: 1, 1, 1>, scalar_prefetch = 0 : i64, scratch_operands = 0 : i64, tpu.core_type = #tpu.core_type<tc>, window_params = [{transform_indices = @transform_0, window_bounds = array<i64: 16, 128>}, {transform_indices = @transform_1, window_bounds = array<i64: 128, 128>}, {transform_indices = @transform_2, window_bounds = array<i64: 1, 128>}, {transform_indices = @transform_3, window_bounds = array<i64: 16, 128>}]} {
    %c0_i32 = arith.constant 0 : i32
    %0 = arith.cmpi eq, %arg2, %c0_i32 : i32
    %1 = arith.extui %0 : i1 to i32
    %c0_i32_0 = arith.constant 0 : i32
    %2 = arith.cmpi ne, %1, %c0_i32_0 : i32
    scf.if %2 {
      %cst_10 = arith.constant 0.000000e+00 : f32
      %12 = vector.broadcast %cst_10 : f32 to vector<16x128xf32>
      %c0_11 = arith.constant 0 : index
      %c0_12 = arith.constant 0 : index
      %13 = vector.load %arg6[%c0_11, %c0_12] : memref<16x128xf32, #tpu.memory_space<vmem>>, vector<16x128xf32>
      tpu.vector_store %arg6[%c0_11, %c0_12], %12 {strides = array<i32>} : memref<16x128xf32, #tpu.memory_space<vmem>>, vector<16x128xf32>,
    } else {
    }
    %c0 = arith.constant 0 : index
    %c0_1 = arith.constant 0 : index
    %3 = vector.load %arg6[%c0, %c0_1] : memref<16x128xf32, #tpu.memory_space<vmem>>, vector<16x128xf32>
    %c0_2 = arith.constant 0 : index
    %c0_3 = arith.constant 0 : index
    %4 = vector.load %arg3[%c0_2, %c0_3] : memref<16x128xf32, #tpu.memory_space<vmem>>, vector<16x128xf32>
    %c0_4 = arith.constant 0 : index
    %c0_5 = arith.constant 0 : index
    %5 = vector.load %arg4[%c0_4, %c0_5] : memref<128x128xf32, #tpu.memory_space<vmem>>, vector<128x128xf32>
    %cst = arith.constant dense<0.000000e+00> : vector<16x128xf32>
    %6 = tpu.matmul %4, %5, %cst {dimension_numbers = #tpu.dot_dimension_numbers<[1], [0], [0], [1], [0, 0, 1, 1], [], []>} : vector<16x128xf32>, vector<128x128xf32>, vector<16x128xf32> -> vector<16x128xf32>
    %7 = arith.addf %3, %6 : vector<16x128xf32>
    %c0_6 = arith.constant 0 : index
    %c0_7 = arith.constant 0 : index
    %8 = vector.load %arg6[%c0_6, %c0_7] : memref<16x128xf32, #tpu.memory_space<vmem>>, vector<16x128xf32>
    tpu.vector_store %arg6[%c0_6, %c0_7], %7 {strides = array<i32>} : memref<16x128xf32, #tpu.memory_space<vmem>>, vector<16x128xf32>,
    %c0_i32_8 = arith.constant 0 : i32
    %9 = arith.cmpi eq, %arg2, %c0_i32_8 : i32
    %10 = arith.extui %9 : i1 to i32
    %c0_i32_9 = arith.constant 0 : i32
    %11 = arith.cmpi ne, %10, %c0_i32_9 : i32
    scf.if %11 {
      %c0_10 = arith.constant 0 : index
      %c0_11 = arith.constant 0 : index
      %12 = vector.load %arg6[%c0_10, %c0_11] : memref<16x128xf32, #tpu.memory_space<vmem>>, vector<16x128xf32>
      %c0_12 = arith.constant 0 : index
      %c0_13 = arith.constant 0 : index
      %13 = vector.load %arg5[%c0_12, %c0_13] : memref<1x128xf32, #tpu.memory_space<vmem>>, vector<1x128xf32>
      %14 = vector.broadcast %13 : vector<1x128xf32> to vector<16x128xf32>
      %15 = arith.addf %12, %14 : vector<16x128xf32>
      %c0_14 = arith.constant 0 : index
      %c0_15 = arith.constant 0 : index
      %16 = vector.load %arg6[%c0_14, %c0_15] : memref<16x128xf32, #tpu.memory_space<vmem>>, vector<16x128xf32>
      tpu.vector_store %arg6[%c0_14, %c0_15], %15 {strides = array<i32>} : memref<16x128xf32, #tpu.memory_space<vmem>>, vector<16x128xf32>,
    } else {
    }
    return
  }
  func.func @transform_0(%arg0: i32, %arg1: i32, %arg2: i32) -> (i32, i32) {
    %c0_i32 = arith.constant 0 : i32
    return %arg0, %arg2 : i32, i32
  }
  func.func @transform_1(%arg0: i32, %arg1: i32, %arg2: i32) -> (i32, i32) {
    %c0_i32 = arith.constant 0 : i32
    return %arg2, %arg1 : i32, i32
  }
  func.func @transform_2(%arg0: i32, %arg1: i32, %arg2: i32) -> (i32, i32) {
    %c0_i32 = arith.constant 0 : i32
    %c0_i32_0 = arith.constant 0 : i32
    return %c0_i32, %arg1 : i32, i32
  }
  func.func @transform_3(%arg0: i32, %arg1: i32, %arg2: i32) -> (i32, i32) {
    %c0_i32 = arith.constant 0 : i32
    return %arg0, %arg1 : i32, i32
  }
}

</mosaic_0001>

<bundles_post_ra>
// kernel: _linear_apply.1
= control target key start
LH: loop header
LB: loop body
LE: loop exit
PB: predicated region body
PF: predicated region fallthrough
CT: control target
= control target key end

     0   :  { %8 = vsyncpa [#allocation3], 0  ;;  %s234_s12 = smov [#allocation2]   ;;  %s275_s0 = inlined_call_operand.vmem [shape: f32[16,128], index: 0, kind: input, shape index: {}]   ;;  %s276_s1 = inlined_call_operand.hbm [shape: f32[128,128], index: 1, kind: input, shape index: {}]   ;;  %s277_s2 = inlined_call_operand.vmem [shape: f32[1,128], index: 2, kind: input, shape index: {}]   ;;  %s278_s3 = inlined_call_operand.vmem [shape: f32[16,128], index: 3, kind: output, shape index: {}]  }
   0x1   :  { %s16_s13 = sshll.u32 %s234_s12, 4  ;;  %s17_s13 = int_to_ptr.vmem [resolvable:$true] %s16_s13 }
   0x2   :  { %s220_s14 = scalar_lea.vmem %s17_s13, 2048  ;;  %p225_p1 = scmp.lt.s32.totalorder %s17_s13, %s17_s13 }
   0x3   :  { %p221_p0 = scmp.ne.s32.totalorder %s17_s13, %s220_s14  ;;  %p226_p2 = scmp.lt.s32.totalorder %s220_s14, %s220_s14 }
   0x5   :  { %p227_p3 = por %p226_p2, %p225_p1 }
   0x7   :  { %p228_p4 = pnand %p227_p3, %p221_p0 }
   0x9   :  { %231 = shalt.err (!%p228_p4)
}
   0xa   :  { %s235_s15 = smov 128   ;;  %s236_s16 = smov 8  }
   0xb   :  { %22 = dma.hbm_to_vmem [thread:$0]  %s276_s1, 2048, %s17_s13, [#allocation3], %s235_s15, %s235_s15, %s236_s16  }
   0xc   :  { %232 = dma.done.wait [#allocation3], 2048  }
   0xd   :  { %233 = vsyncadd [#allocation3], 4294965248  ;;  %v53_v0 = vld [vmem:[#allocation2 + $0x78] sm:$0xff]  ;;  %v52_v1 = vld [vmem:[#allocation2 + $0x70] sm:$0xff] }
   0xe   :  { %173 = vmatprep.subr.mxu0 %v53_v0  ;;  %v51_v2 = vld [vmem:[#allocation2 + $0x68] sm:$0xff]  ;;  %v50_v3 = vld [vmem:[#allocation2 + $0x60] sm:$0xff]  ;;  %v49_v5 = vld [vmem:[#allocation2 + $0x58] sm:$0xff] }
   0xf   :  { %174 = vmatpush3.msra.mxu0 %v53_v0  ;;  %v36_v4 = vld [vmem:[%s275_s0] sm:$0xff]  ;;  %v48_v6 = vld [vmem:[#allocation2 + $0x50] sm:$0xff]  ;;  %v47_v7 = vld [vmem:[#allocation2 + $0x48] sm:$0xff] }
  0x10   :  { %175 = vmatprep.subr.mxu0 %v52_v1  ;;  %205 = vmatprep.mubr.f32.mxu0 %v36_v4  ;;  %v46_v8 = vld [vmem:[#allocation2 + $0x40] sm:$0xff]  ;;  %v45_v9 = vld [vmem:[#allocation2 + $0x38] sm:$0xff]  ;;  %v44_v10 = vld [vmem:[#allocation2 + $0x30] sm:$0xff] }
  0x11   :  { %176 = vmatpush3.msra.mxu0 %v52_v1  ;;  %v43_v11 = vld [vmem:[#allocation2 + $0x28] sm:$0xff]  ;;  %v42_v12 = vld [vmem:[#allocation2 + $0x20] sm:$0xff]  ;;  %v41_v13 = vld [vmem:[#allocation2 + $0x18] sm:$0xff] }
  0x12   :  { %177 = vmatprep.subr.mxu0 %v51_v2  ;;  %v40_v14 = vld [vmem:[#allocation2 + $0x10] sm:$0xff]  ;;  %v39_v15 = vld [vmem:[#allocation2 + $0x8] sm:$0xff]  ;;  %v38_v16 = vld [vmem:[#allocation2] sm:$0xff] }
  0x13   :  { %178 = vmatpush3.msra.mxu0 %v51_v2  ;;  %v37_v17 = vld [vmem:[%s275_s0 + $0x8] sm:$0xff]  ;;  %v154_v19 = vld [vmem:[%s277_s2] ss:$0 sm:$0xff] }
  0x14   :  { %179 = vmatprep.subr.mxu0 %v50_v3 }
  0x15   :  { %180 = vmatpush3.msra.mxu0 %v50_v3 }
  0x16   :  { %181 = vmatprep.subr.mxu0 %v49_v5 }
  0x17   :  { %182 = vmatpush3.msra.mxu0 %v49_v5 }
  0x18   :  { %183 = vmatprep.subr.mxu0 %v48_v6 }
  0x19   :  { %184 = vmatpush3.msra.mxu0 %v48_v6 }
  0x1a   :  { %185 = vmatprep.subr.mxu0 %v47_v7 }
  0x1b   :  { %186 = vmatpush3.msra.mxu0 %v47_v7 }
  0x1c   :  { %187 = vmatprep.subr.mxu0 %v46_v8 }
  0x1d   :  { %188 = vmatpush3.msra.mxu0 %v46_v8 }
  0x1e   :  { %189 = vmatprep.subr.mxu0 %v45_v9 }
  0x1f   :  { %190 = vmatpush3.msra.mxu0 %v45_v9 }
  0x20   :  { %191 = vmatprep.subr.mxu0 %v44_v10 }
  0x21   :  { %192 = vmatpush3.msra.mxu0 %v44_v10 }
  0x22   :  { %193 = vmatprep.subr.mxu0 %v43_v11 }
  0x23   :  { %194 = vmatpush3.msra.mxu0 %v43_v11 }
  0x24   :  { %195 = vmatprep.subr.mxu0 %v42_v12 }
  0x25   :  { %196 = vmatpush3.msra.mxu0 %v42_v12 }
  0x26   :  { %197 = vmatprep.subr.mxu0 %v41_v13 }
  0x27   :  { %198 = vmatpush3.msra.mxu0 %v41_v13 }
  0x28   :  { %199 = vmatprep.subr.mxu0 %v40_v14 }
  0x29   :  { %200 = vmatpush3.msra.mxu0 %v40_v14 }
  0x2a   :  { %201 = vmatprep.subr.mxu0 %v39_v15 }
  0x2b   :  { %202 = vmatpush3.msra.mxu0 %v39_v15 }
  0x2c   :  { %203 = vmatprep.subr.mxu0 %v38_v16 }
  0x2d   :  { %204 = vmatpush3.msra.mxu0 %v38_v16 }
  0x2e   :  { %206 = vmatmul.mubr.f32.vlgmr.msra.gmra.mxu0 %v37_v17 }
  0xee   :  { %v207_v18 = vpop.f32.mrf.mxu0 }
  0xef   :  { %v146_v21 = vadd.f32 %v207_v18, %v154_v19 }
  0xf0   :  { %v120_v20 = vpop.f32.mrf.mxu0 }
  0xf1   :  { %148 = vst [vmem:[%s278_s3 + $0x8] sm:$0xff] %v146_v21  ;;  %v145_v22 = vadd.f32 %v154_v19, %v120_v20 }
  0xf3   :  { %147 = vst [vmem:[%s278_s3] sm:$0xff] %v145_v22 }
  0xf4   :  { %153 = vsyncpa [#allocation3], 1 }

</bundles_post_ra>
